<compile_context>
chip_gen: v6e
topology: v6e:2x2x1
jax: 0.10.0
libtpu: 0.0.40
codegen_flags: <defaults>
</compile_context>

<pallas_src>
import functools

import jax
import jax.numpy as jnp
from jax.experimental import pallas as pl
from jax.experimental.pallas import tpu as pltpu

# ----- hyper-parameters implied by the PyTorch module -----
BATCH = 6            # hard-coded in the module: position.expand(6, 30)
SEQ = 30             # hard-coded in the module
LEN_VOCAB = 40
SEQ_MAX_LEN = 30
EMBED_SIZE = 32
LN_EPS = 1e-5

TABLE_K = 128        # matmul table rows: 40 tok + 40 seg = 80 -> zero-pad to 128
CHUNK = 128          # lane-axis slab processed per MXU contraction


def _n_pad(n):
    return max(CHUNK, pl.cdiv(n, CHUNK) * CHUNK)


def _embedding_kernel(ids_ref, table_t_ref, pos_slab_ref, gamma_ref, beta_ref,
                      out_ref, *, n_tokens):
    # ids_ref:      (2, Np) int32, rows = [tok_id, V + seg_id] (seg pre-offset)
    # table_t_ref:  (E, K)  f32, (tok | seg | pad) table, transposed (K = 128)
    # pos_slab_ref: (E, Np) f32, precomputed position embeddings, lane-dense
    # gamma/beta:   (E, 1)  f32
    # out_ref:      (N, E)  f32, token-major (matches the module's output layout)
    E = table_t_ref.shape[0]
    inv_e = 1.0 / E
    table_t = table_t_ref[...]                   # (E, K)
    gamma = gamma_ref[...]                       # (E, 1)
    beta = beta_ref[...]                         # (E, 1)

    n_chunks = ids_ref.shape[1] // CHUNK
    for c in range(n_chunks):                    # static: two 128-lane slabs
        lo = c * CHUNK
        tok = ids_ref[0:1, lo:lo + CHUNK]        # (1, 128)
        seg = ids_ref[1:2, lo:lo + CHUNK]        # (1, 128), already offset by V
        row = jax.lax.broadcasted_iota(jnp.int32, (TABLE_K, CHUNK), 0)
        onehot = ((row == tok) | (row == seg)).astype(jnp.float32)   # (K, 128)

        # (E, K) @ (K, 128) -> (E, 128); tok+seg sum happens inside one contraction.
        x = jnp.dot(table_t, onehot, preferred_element_type=jnp.float32)
        x = x + pos_slab_ref[:, lo:lo + CHUNK]   # position contribution (precomputed)

        # two-pass LayerNorm over the embedding (sublane) axis
        mean = jnp.sum(x, axis=0, keepdims=True) * inv_e
        xc = x - mean
        var = jnp.sum(xc * xc, axis=0, keepdims=True) * inv_e
        inv_std = jax.lax.rsqrt(var + LN_EPS)
        y = xc * inv_std * gamma + beta          # (E, 128)

        # Transpose in-kernel (XLU) and store only the valid token rows; the
        # padded lanes (tok/seg id 0, zero position) are never written out.
        y_t = y.T                                # (128, E)
        valid = min(CHUNK, n_tokens - lo)        # static per slab
        out_ref[lo:lo + valid, :] = y_t[:valid, :]


def prepare_params(params, batch, seq):
    """One-time packing of parameters into kernel-friendly layouts.

    Everything here depends only on params / static shapes, so it is hoisted out
    of the per-call forward (saves 2-3 XLA dispatches per call in an
    overhead-bound regime).
    """
    assert seq <= SEQ_MAX_LEN, "sequence length exceeds the position table"
    E, V = EMBED_SIZE, LEN_VOCAB
    n = batch * seq
    n_pad = _n_pad(n)

    # (tok | seg | zero pad) -> (128, E), transposed for the lane-dense matmul.
    table = jnp.concatenate(
        [params["token_embed"], params["seg_embed"],
         jnp.zeros((TABLE_K - 2 * V, E), jnp.float32)], axis=0)

    # Position embeddings are input-independent: bake them into a lane-dense
    # (E, n_pad) slab added after the matmul (no pos ids, no in-kernel modulo).
    pos = jnp.tile(params["position_embed"][:seq], (batch, 1))        # (n, E)
    pos = jnp.pad(pos, ((0, n_pad - n), (0, 0)))                      # (n_pad, E)

    return {
        "table_t": table.T,                                           # (E, 128)
        "pos_slab": pos.T,                                            # (E, n_pad)
        "gamma": params["ln_gamma"].reshape(E, 1),
        "beta": params["ln_beta"].reshape(E, 1),
    }


def embedding_forward(input_ids, segment_ids, packed):
    """input_ids, segment_ids: (B, S) int32. Returns (B, S, E) float32."""
    B, S = input_ids.shape
    N = B * S
    E = EMBED_SIZE
    n_pad = _n_pad(N)
    assert packed["pos_slab"].shape == (E, n_pad), "packed params built for a different (B, S)"

    # Per-call prep is just one (2, n_pad) int32 pack of the runtime-dependent ids.
    # NOTE: ids are assumed in-range ([0, V)); out-of-range ids silently select
    # other rows of the packed table (same behavior class as torch gather).
    ids = jnp.stack([input_ids.reshape(-1).astype(jnp.int32),
                     segment_ids.reshape(-1).astype(jnp.int32) + LEN_VOCAB], axis=0)
    ids = jnp.pad(ids, ((0, 0), (0, n_pad - N)))                      # (2, n_pad)

    full = lambda shape: pl.BlockSpec(shape, lambda: (0,) * len(shape))

    out = pl.pallas_call(
        functools.partial(_embedding_kernel, n_tokens=N),
        out_shape=jax.ShapeDtypeStruct((N, E), jnp.float32),
        grid=(),                      # ~85 KB working set: single invocation, no pipeline
        in_specs=[
            full((2, n_pad)),         # packed tok / seg ids
            full((E, TABLE_K)),       # transposed (tok|seg) table
            full((E, n_pad)),         # precomputed position slab
            full((E, 1)),             # LayerNorm gamma
            full((E, 1)),             # LayerNorm beta
        ],
        out_specs=full((N, E)),
        compiler_params=pltpu.CompilerParams(vmem_limit_bytes=2 * 1024 * 1024),
    )(ids, packed["table_t"], packed["pos_slab"], packed["gamma"], packed["beta"])

    # Row-major split of the leading axis: a free (bitcast) reshape, no transpose.
    return out.reshape(B, S, E)


def _reference(input_ids, segment_ids, params):
    """Pure-JAX reference mirroring the PyTorch forward."""
    B, S = input_ids.shape
    pos = jnp.broadcast_to(jnp.arange(S), (B, S))
    x = (params["token_embed"][input_ids]
         + params["position_embed"][pos]
         + params["seg_embed"][segment_ids])
    mean = jnp.mean(x, axis=-1, keepdims=True)
    var = jnp.mean((x - mean) ** 2, axis=-1, keepdims=True)
    xn = (x - mean) / jnp.sqrt(var + LN_EPS)
    return xn * params["ln_gamma"] + params["ln_beta"]


if __name__ == "__main__":
    key = jax.random.PRNGKey(0)
    k_tok, k_pos, k_seg, k_ids, k_segids = jax.random.split(key, 5)

    # Deterministic parameter init (nn.Embedding ~ N(0,1); LayerNorm gamma=1, beta=0).
    params = {
        "token_embed": jax.random.normal(k_tok, (LEN_VOCAB, EMBED_SIZE), jnp.float32),
        "position_embed": jax.random.normal(k_pos, (SEQ_MAX_LEN, EMBED_SIZE), jnp.float32),
        "seg_embed": jax.random.normal(k_seg, (LEN_VOCAB, EMBED_SIZE), jnp.float32),
        "ln_gamma": jnp.ones((EMBED_SIZE,), jnp.float32),
        "ln_beta": jnp.zeros((EMBED_SIZE,), jnp.float32),
    }

    input_ids = jax.random.randint(k_ids, (BATCH, SEQ), 0, LEN_VOCAB, dtype=jnp.int32)
    segment_ids = jax.random.randint(k_segids, (BATCH, SEQ), 0, 2, dtype=jnp.int32)

    # Parameter packing happens exactly once, outside the forward.
    packed = prepare_params(params, BATCH, SEQ)
    packed = jax.tree_util.tree_map(jax.block_until_ready, packed)

    fwd = jax.jit(embedding_forward)
    out = fwd(input_ids, segment_ids, packed)
    out = jax.block_until_ready(out)

    ref = _reference(input_ids, segment_ids, params)
    assert out.shape == (BATCH, SEQ, EMBED_SIZE)
    assert jnp.allclose(out, ref, atol=1e-4, rtol=1e-4)

    print("KERNEL_OK")
</pallas_src>

<mosaic_0001>
module attributes {stable_mosaic.version = 11 : i64} {
  func.func @_embedding_kernel(%arg0: memref<2x256xi32, #tpu.memory_space<vmem>>, %arg1: memref<32x128xf32, #tpu.memory_space<vmem>>, %arg2: memref<32x256xf32, #tpu.memory_space<vmem>>, %arg3: memref<32x1xf32, #tpu.memory_space<vmem>>, %arg4: memref<32x1xf32, #tpu.memory_space<vmem>>, %arg5: memref<180x32xf32, #tpu.memory_space<vmem>>) attributes {dimension_semantics = [], scalar_prefetch = 0 : i64, scratch_operands = 0 : i64, tpu.core_type = #tpu.core_type<tc>} {
    %c0 = arith.constant 0 : index
    %c0_0 = arith.constant 0 : index
    %0 = vector.load %arg1[%c0, %c0_0] : memref<32x128xf32, #tpu.memory_space<vmem>>, vector<32x128xf32>
    %c0_1 = arith.constant 0 : index
    %c0_2 = arith.constant 0 : index
    %1 = vector.load %arg3[%c0_1, %c0_2] : memref<32x1xf32, #tpu.memory_space<vmem>>, vector<32x1xf32>
    %c0_3 = arith.constant 0 : index
    %c0_4 = arith.constant 0 : index
    %2 = vector.load %arg4[%c0_3, %c0_4] : memref<32x1xf32, #tpu.memory_space<vmem>>, vector<32x1xf32>
    %c0_5 = arith.constant 0 : index
    %c0_6 = arith.constant 0 : index
    %3 = vector.load %arg0[%c0_5, %c0_6] : memref<2x256xi32, #tpu.memory_space<vmem>>, vector<1x128xi32>
    %c1 = arith.constant 1 : index
    %c0_7 = arith.constant 0 : index
    %4 = vector.load %arg0[%c1, %c0_7] : memref<2x256xi32, #tpu.memory_space<vmem>>, vector<1x128xi32>
    %5 = tpu.iota {dimensions = array<i32: 0>} : vector<128x128xi32>
    %6 = vector.broadcast %3 : vector<1x128xi32> to vector<128x128xi32>
    %7 = arith.cmpi eq, %5, %6 : vector<128x128xi32>
    %8 = vector.broadcast %4 : vector<1x128xi32> to vector<128x128xi32>
    %9 = arith.cmpi eq, %5, %8 : vector<128x128xi32>
    %10 = arith.ori %7, %9 : vector<128x128xi1>
    %11 = arith.extui %10 : vector<128x128xi1> to vector<128x128xi32>
    %12 = arith.sitofp %11 : vector<128x128xi32> to vector<128x128xf32>
    %cst = arith.constant dense<0.000000e+00> : vector<32x128xf32>
    %13 = tpu.matmul %0, %12, %cst {dimension_numbers = #tpu.dot_dimension_numbers<[1], [0], [0], [1], [0, 0, 1, 1], [], []>} : vector<32x128xf32>, vector<128x128xf32>, vector<32x128xf32> -> vector<32x128xf32>
    %c0_8 = arith.constant 0 : index
    %c0_9 = arith.constant 0 : index
    %14 = vector.load %arg2[%c0_8, %c0_9] : memref<32x256xf32, #tpu.memory_space<vmem>>, vector<32x128xf32>
    %15 = arith.addf %13, %14 : vector<32x128xf32>
    %cst_10 = arith.constant dense<0.000000e+00> : vector<128xf32>
    %16 = vector.multi_reduction <add>, %15, %cst_10 [0] : vector<32x128xf32> to vector<128xf32>
    %17 = vector.shape_cast %16 : vector<128xf32> to vector<1x128xf32>
    %cst_11 = arith.constant 3.125000e-02 : f32
    %18 = vector.broadcast %cst_11 : f32 to vector<1x128xf32>
    %19 = arith.mulf %17, %18 : vector<1x128xf32>
    %20 = vector.broadcast %19 : vector<1x128xf32> to vector<32x128xf32>
    %21 = arith.subf %15, %20 : vector<32x128xf32>
    %22 = arith.mulf %21, %21 : vector<32x128xf32>
    %cst_12 = arith.constant dense<0.000000e+00> : vector<128xf32>
    %23 = vector.multi_reduction <add>, %22, %cst_12 [0] : vector<32x128xf32> to vector<128xf32>
    %24 = vector.shape_cast %23 : vector<128xf32> to vector<1x128xf32>
    %cst_13 = arith.constant 3.125000e-02 : f32
    %25 = vector.broadcast %cst_13 : f32 to vector<1x128xf32>
    %26 = arith.mulf %24, %25 : vector<1x128xf32>
    %cst_14 = arith.constant 9.99999974E-6 : f32
    %27 = vector.broadcast %cst_14 : f32 to vector<1x128xf32>
    %28 = arith.addf %26, %27 : vector<1x128xf32>
    %29 = math.rsqrt %28 : vector<1x128xf32>
    %30 = vector.broadcast %29 : vector<1x128xf32> to vector<32x128xf32>
    %31 = arith.mulf %21, %30 : vector<32x128xf32>
    %32 = vector.broadcast %1 : vector<32x1xf32> to vector<32x128xf32>
    %33 = arith.mulf %31, %32 : vector<32x128xf32>
    %34 = vector.broadcast %2 : vector<32x1xf32> to vector<32x128xf32>
    %35 = arith.addf %33, %34 : vector<32x128xf32>
    %36 = tpu.transpose %35, [1, 0] : vector<32x128xf32> -> vector<128x32xf32>
    %c0_15 = arith.constant 0 : index
    %c0_16 = arith.constant 0 : index
    %37 = vector.load %arg5[%c0_15, %c0_16] : memref<180x32xf32, #tpu.memory_space<vmem>>, vector<128x32xf32>
    tpu.vector_store %arg5[%c0_15, %c0_16], %36 {strides = array<i32>} : memref<180x32xf32, #tpu.memory_space<vmem>>, vector<128x32xf32>,
    %c0_17 = arith.constant 0 : index
    %c128 = arith.constant 128 : index
    %38 = vector.load %arg0[%c0_17, %c128] : memref<2x256xi32, #tpu.memory_space<vmem>>, vector<1x128xi32>
    %c1_18 = arith.constant 1 : index
    %c128_19 = arith.constant 128 : index
    %39 = vector.load %arg0[%c1_18, %c128_19] : memref<2x256xi32, #tpu.memory_space<vmem>>, vector<1x128xi32>
    %40 = tpu.iota {dimensions = array<i32: 0>} : vector<128x128xi32>
    %41 = vector.broadcast %38 : vector<1x128xi32> to vector<128x128xi32>
    %42 = arith.cmpi eq, %40, %41 : vector<128x128xi32>
    %43 = vector.broadcast %39 : vector<1x128xi32> to vector<128x128xi32>
    %44 = arith.cmpi eq, %40, %43 : vector<128x128xi32>
    %45 = arith.ori %42, %44 : vector<128x128xi1>
    %46 = arith.extui %45 : vector<128x128xi1> to vector<128x128xi32>
    %47 = arith.sitofp %46 : vector<128x128xi32> to vector<128x128xf32>
    %cst_20 = arith.constant dense<0.000000e+00> : vector<32x128xf32>
    %48 = tpu.matmul %0, %47, %cst_20 {dimension_numbers = #tpu.dot_dimension_numbers<[1], [0], [0], [1], [0, 0, 1, 1], [], []>} : vector<32x128xf32>, vector<128x128xf32>, vector<32x128xf32> -> vector<32x128xf32>
    %c0_21 = arith.constant 0 : index
    %c128_22 = arith.constant 128 : index
    %49 = vector.load %arg2[%c0_21, %c128_22] : memref<32x256xf32, #tpu.memory_space<vmem>>, vector<32x128xf32>
    %50 = arith.addf %48, %49 : vector<32x128xf32>
    %cst_23 = arith.constant dense<0.000000e+00> : vector<128xf32>
    %51 = vector.multi_reduction <add>, %50, %cst_23 [0] : vector<32x128xf32> to vector<128xf32>
    %52 = vector.shape_cast %51 : vector<128xf32> to vector<1x128xf32>
    %cst_24 = arith.constant 3.125000e-02 : f32
    %53 = vector.broadcast %cst_24 : f32 to vector<1x128xf32>
    %54 = arith.mulf %52, %53 : vector<1x128xf32>
    %55 = vector.broadcast %54 : vector<1x128xf32> to vector<32x128xf32>
    %56 = arith.subf %50, %55 : vector<32x128xf32>
    %57 = arith.mulf %56, %56 : vector<32x128xf32>
    %cst_25 = arith.constant dense<0.000000e+00> : vector<128xf32>
    %58 = vector.multi_reduction <add>, %57, %cst_25 [0] : vector<32x128xf32> to vector<128xf32>
    %59 = vector.shape_cast %58 : vector<128xf32> to vector<1x128xf32>
    %cst_26 = arith.constant 3.125000e-02 : f32
    %60 = vector.broadcast %cst_26 : f32 to vector<1x128xf32>
    %61 = arith.mulf %59, %60 : vector<1x128xf32>
    %cst_27 = arith.constant 9.99999974E-6 : f32
    %62 = vector.broadcast %cst_27 : f32 to vector<1x128xf32>
    %63 = arith.addf %61, %62 : vector<1x128xf32>
    %64 = math.rsqrt %63 : vector<1x128xf32>
    %65 = vector.broadcast %64 : vector<1x128xf32> to vector<32x128xf32>
    %66 = arith.mulf %56, %65 : vector<32x128xf32>
    %67 = vector.broadcast %1 : vector<32x1xf32> to vector<32x128xf32>
    %68 = arith.mulf %66, %67 : vector<32x128xf32>
    %69 = vector.broadcast %2 : vector<32x1xf32> to vector<32x128xf32>
    %70 = arith.addf %68, %69 : vector<32x128xf32>
    %71 = tpu.transpose %70, [1, 0] : vector<32x128xf32> -> vector<128x32xf32>
    %72 = vector.extract_strided_slice %71 {offsets = [0, 0], sizes = [52, 32], strides = [1, 1]} : vector<128x32xf32> to vector<52x32xf32>
    %c128_28 = arith.constant 128 : index
    %c0_29 = arith.constant 0 : index
    %73 = vector.load %arg5[%c128_28, %c0_29] : memref<180x32xf32, #tpu.memory_space<vmem>>, vector<52x32xf32>
    tpu.vector_store %arg5[%c128_28, %c0_29], %72 {strides = array<i32>} : memref<180x32xf32, #tpu.memory_space<vmem>>, vector<52x32xf32>,
    return
  }
}

</mosaic_0001>

<bundles_post_ra>
// kernel: embedding_forward.1
= control target key start
LH: loop header
LB: loop body
LE: loop exit
PB: predicated region body
PF: predicated region fallthrough
CT: control target
= control target key end

     0   :  { %v34_v0 = vlaneseq  ;;  %v817_v1 = vmov 0   ;;  %v818_v14 = vmov 1.0   ;;  %s1238_s0 = inlined_call_operand.vmem [shape: s32[2,256], index: 0, kind: input, shape index: {}]   ;;  %s1239_s1 = inlined_call_operand.vmem [shape: f32[32,128], index: 1, kind: input, shape index: {}]   ;;  %s1240_s3 = inlined_call_operand.vmem [shape: f32[32,1], index: 3, kind: input, shape index: {}]   ;;  %s1241_s4 = inlined_call_operand.vmem [shape: f32[32,1], index: 4, kind: input, shape index: {}]   ;;  %s1242_s2 = inlined_call_operand.vmem [shape: f32[32,256], index: 2, kind: input, shape index: {}]   ;;  %s1243_s5 = inlined_call_operand.vmem [shape: f32[180,32], index: 5, kind: output, shape index: {}]  }
   0x1   :  { %811 = vset.pattern.permute.xlu0 %v817_v1  ;;  %812 = vset.pattern.permute.xlu1 %v817_v1  ;;  %v852_v2 = vld [vmem:[%s1238_s0] ss:$0 sm:$0xff]  ;;  %v857_v3 = vld [vmem:[%s1238_s0 + $0x1] ss:$0 sm:$0xff]  ;;  %v867_v6 = vld [vmem:[%s1238_s0 + $0x2] ss:$0 sm:$0xff] }
   0x2   :  { %v859_v4 = vshrl.u32 %v34_v0, 7  ;;  %v20_v5 = vld [vmem:[%s1239_s1] sm:$0xff]  ;;  %v21_v26 = vld [vmem:[%s1239_s1 + $0x8] sm:$0xff]  ;;  %v22_v27 = vld [vmem:[%s1239_s1 + $0x10] sm:$0xff] }
   0x3   :  { %v872_v7 = vld [vmem:[%s1238_s0 + $0x3] ss:$0 sm:$0xff]  ;;  %764 = vmatprep.mubr.f32.mxu0 %v20_v5  ;;  %802 = vmatprep.mubr.f32.mxu1 %v20_v5  ;;  %v25_v28 = vld [vmem:[%s1240_s3 + $0x8] sm:$0xff]  ;;  %v26_v29 = vld [vmem:[%s1240_s3 + $0x10] sm:$0xff] }
   0x4   :  { %v24_v8 = vld [vmem:[%s1240_s3] sm:$0xff]  ;;  %v50_v9 = vadd.s32 120, %v859_v4  ;;  %v49_v10 = vadd.s32 112, %v859_v4  ;;  %v48_v11 = vadd.s32 104, %v859_v4  ;;  %v47_v13 = vadd.s32 96, %v859_v4  ;;  %v23_v30 = vld [vmem:[%s1239_s1 + $0x18] sm:$0xff] }
   0x5   :  { %264 = vperm.xlu0 %811, %v24_v8   ;;  %v28_v12 = vld [vmem:[%s1241_s4] sm:$0xff]  ;;  %v46_v15 = vadd.s32 88, %v859_v4  ;;  %v45_v16 = vadd.s32 80, %v859_v4  ;;  %v44_v17 = vadd.s32 72, %v859_v4  ;;  %v43_v18 = vadd.s32 64, %v859_v4  ;;  %v29_v31 = vld [vmem:[%s1241_s4 + $0x8] sm:$0xff] }
   0x6   :  { %288 = vperm.xlu1 %812, %v28_v12   ;;  %vm70_vm0 = vcmp.eq.s32.totalorder %v50_v9, %v852_v2  ;;  %vm90_vm1 = vcmp.eq.s32.totalorder %v50_v9, %v857_v3  ;;  %vm380_vm2 = vcmp.eq.s32.totalorder %v50_v9, %v867_v6  ;;  %vm400_vm3 = vcmp.eq.s32.totalorder %v50_v9, %v872_v7  ;;  %v27_v32 = vld [vmem:[%s1240_s3 + $0x18] sm:$0xff]  ;;  %v30_v33 = vld [vmem:[%s1241_s4 + $0x10] sm:$0xff]  ;;  %v139_v37 = vld [vmem:[%s1242_s2] sm:$0xff] }
   0x7   :  { %vm106_vm4 = vmor %vm70_vm0, %vm90_vm1  ;;  %vm69_vm5 = vcmp.eq.s32.totalorder %v49_v10, %v852_v2  ;;  %vm89_vm6 = vcmp.eq.s32.totalorder %v49_v10, %v857_v3  ;;  %vm379_vm7 = vcmp.eq.s32.totalorder %v49_v10, %v867_v6  ;;  %vm399_vm8 = vcmp.eq.s32.totalorder %v49_v10, %v872_v7  ;;  %v31_v34 = vld [vmem:[%s1241_s4 + $0x18] sm:$0xff]  ;;  %v449_v39 = vld [vmem:[%s1242_s2 + $0x8] sm:$0xff] }
   0x8   :  { %732 = vmatprep.subr.msk.mxu0 %vm106_vm4, %v818_v14  ;;  %vm416_vm9 = vmor %vm380_vm2, %vm400_vm3  ;;  %vm68_vm10 = vcmp.eq.s32.totalorder %v48_v11, %v852_v2  ;;  %vm88_vm11 = vcmp.eq.s32.totalorder %v48_v11, %v857_v3  ;;  %vm378_vm13 = vcmp.eq.s32.totalorder %v48_v11, %v867_v6  ;;  %vm398_vm14 = vcmp.eq.s32.totalorder %v48_v11, %v872_v7  ;;  %v450_v35 = vld [vmem:[%s1242_s2 + $0x18] sm:$0xff]  ;;  %v140_v40 = vld [vmem:[%s1242_s2 + $0x10] sm:$0xff] }
   0x9   :  { %770 = vmatprep.subr.msk.mxu1 %vm416_vm9, %v818_v14  ;;  %733 = vmatpush3.msk.msra.mxu0 %vm106_vm4, %v818_v14  ;;  %vm105_vm12 = vmor %vm69_vm5, %vm89_vm6  ;;  %vm67_vm0 = vcmp.eq.s32.totalorder %v47_v13, %v852_v2  ;;  %vm87_vm1 = vcmp.eq.s32.totalorder %v47_v13, %v857_v3  ;;  %vm377_vm3 = vcmp.eq.s32.totalorder %v47_v13, %v867_v6  ;;  %v42_v19 = vadd.s32 56, %v859_v4  ;;  %v141_v47 = vld [vmem:[%s1242_s2 + $0x20] sm:$0xff]  ;;  %v452_v49 = vld [vmem:[%s1242_s2 + $0x38] sm:$0xff] }
   0xa   :  { %771 = vmatpush3.msk.msra.mxu1 %vm416_vm9, %v818_v14  ;;  %734 = vmatprep.subr.msk.mxu0 %vm105_vm12, %v818_v14  ;;  %vm415_vm15 = vmor %vm379_vm7, %vm399_vm8  ;;  %vm397_vm4 = vcmp.eq.s32.totalorder %v47_v13, %v872_v7  ;;  %vm66_vm6 = vcmp.eq.s32.totalorder %v46_v15, %v852_v2  ;;  %vm86_vm7 = vcmp.eq.s32.totalorder %v46_v15, %v857_v3  ;;  %v41_v20 = vadd.s32 48, %v859_v4  ;;  %v451_v51 = vld [vmem:[%s1242_s2 + $0x28] sm:$0xff]  ;;  %v142_v53 = vld [vmem:[%s1242_s2 + $0x30] sm:$0xff] }
   0xb   :  { %772 = vmatprep.subr.msk.mxu1 %vm415_vm15, %v818_v14  ;;  %735 = vmatpush3.msk.msra.mxu0 %vm105_vm12, %v818_v14  ;;  %vm104_vm2 = vmor %vm68_vm10, %vm88_vm11  ;;  %vm376_vm9 = vcmp.eq.s32.totalorder %v46_v15, %v867_v6  ;;  %vm396_vm10 = vcmp.eq.s32.totalorder %v46_v15, %v872_v7  ;;  %vm65_vm12 = vcmp.eq.s32.totalorder %v45_v16, %v852_v2  ;;  %v40_v21 = vadd.s32 40, %v859_v4 }
   0xc   :  { %773 = vmatpush3.msk.msra.mxu1 %vm415_vm15, %v818_v14  ;;  %736 = vmatprep.subr.msk.mxu0 %vm104_vm2, %v818_v14  ;;  %vm414_vm5 = vmor %vm378_vm13, %vm398_vm14  ;;  %vm85_vm13 = vcmp.eq.s32.totalorder %v45_v16, %v857_v3  ;;  %vm375_vm15 = vcmp.eq.s32.totalorder %v45_v16, %v867_v6  ;;  %v39_v22 = vadd.s32 32, %v859_v4  ;;  %v38_v23 = vadd.s32 24, %v859_v4 }
   0xd   :  { %774 = vmatprep.subr.msk.mxu1 %vm414_vm5, %v818_v14  ;;  %737 = vmatpush3.msk.msra.mxu0 %vm104_vm2, %v818_v14  ;;  %vm103_vm8 = vmor %vm67_vm0, %vm87_vm1  ;;  %vm395_vm0 = vcmp.eq.s32.totalorder %v45_v16, %v872_v7  ;;  %vm64_vm2 = vcmp.eq.s32.totalorder %v44_v17, %v852_v2  ;;  %v37_v24 = vadd.s32 16, %v859_v4  ;;  %v36_v25 = vadd.s32 8, %v859_v4 }
   0xe   :  { %775 = vmatpush3.msk.msra.mxu1 %vm414_vm5, %v818_v14  ;;  %738 = vmatprep.subr.msk.mxu0 %vm103_vm8, %v818_v14  ;;  %vm413_vm11 = vmor %vm377_vm3, %vm397_vm4  ;;  %vm84_vm3 = vcmp.eq.s32.totalorder %v44_v17, %v857_v3  ;;  %vm374_vm5 = vcmp.eq.s32.totalorder %v44_v17, %v867_v6 }
   0xf   :  { %776 = vmatprep.subr.msk.mxu1 %vm413_vm11, %v818_v14  ;;  %739 = vmatpush3.msk.msra.mxu0 %vm103_vm8, %v818_v14  ;;  %vm102_vm14 = vmor %vm66_vm6, %vm86_vm7  ;;  %vm394_vm6 = vcmp.eq.s32.totalorder %v44_v17, %v872_v7  ;;  %vm63_vm8 = vcmp.eq.s32.totalorder %v43_v18, %v852_v2 }
  0x10   :  { %777 = vmatpush3.msk.msra.mxu1 %vm413_vm11, %v818_v14  ;;  %740 = vmatprep.subr.msk.mxu0 %vm102_vm14, %v818_v14  ;;  %vm412_vm1 = vmor %vm376_vm9, %vm396_vm10  ;;  %vm83_vm9 = vcmp.eq.s32.totalorder %v43_v18, %v857_v3  ;;  %vm373_vm11 = vcmp.eq.s32.totalorder %v43_v18, %v867_v6 }
  0x11   :  { %778 = vmatprep.subr.msk.mxu1 %vm412_vm1, %v818_v14  ;;  %741 = vmatpush3.msk.msra.mxu0 %vm102_vm14, %v818_v14  ;;  %vm101_vm4 = vmor %vm65_vm12, %vm85_vm13  ;;  %vm393_vm12 = vcmp.eq.s32.totalorder %v43_v18, %v872_v7  ;;  %vm62_vm14 = vcmp.eq.s32.totalorder %v42_v19, %v852_v2 }
  0x12   :  { %779 = vmatpush3.msk.msra.mxu1 %vm412_vm1, %v818_v14  ;;  %742 = vmatprep.subr.msk.mxu0 %vm101_vm4, %v818_v14  ;;  %vm411_vm7 = vmor %vm375_vm15, %vm395_vm0  ;;  %vm82_vm15 = vcmp.eq.s32.totalorder %v42_v19, %v857_v3  ;;  %vm372_vm1 = vcmp.eq.s32.totalorder %v42_v19, %v867_v6 }
  0x13   :  { %780 = vmatprep.subr.msk.mxu1 %vm411_vm7, %v818_v14  ;;  %743 = vmatpush3.msk.msra.mxu0 %vm101_vm4, %v818_v14  ;;  %vm100_vm10 = vmor %vm64_vm2, %vm84_vm3  ;;  %vm392_vm2 = vcmp.eq.s32.totalorder %v42_v19, %v872_v7  ;;  %vm61_vm4 = vcmp.eq.s32.totalorder %v41_v20, %v852_v2 }
  0x14   :  { %781 = vmatpush3.msk.msra.mxu1 %vm411_vm7, %v818_v14  ;;  %744 = vmatprep.subr.msk.mxu0 %vm100_vm10, %v818_v14  ;;  %vm410_vm13 = vmor %vm374_vm5, %vm394_vm6  ;;  %vm81_vm5 = vcmp.eq.s32.totalorder %v41_v20, %v857_v3  ;;  %vm371_vm7 = vcmp.eq.s32.totalorder %v41_v20, %v867_v6 }
  0x15   :  { %782 = vmatprep.subr.msk.mxu1 %vm410_vm13, %v818_v14  ;;  %745 = vmatpush3.msk.msra.mxu0 %vm100_vm10, %v818_v14  ;;  %vm99_vm0 = vmor %vm63_vm8, %vm83_vm9  ;;  %vm391_vm8 = vcmp.eq.s32.totalorder %v41_v20, %v872_v7  ;;  %vm60_vm10 = vcmp.eq.s32.totalorder %v40_v21, %v852_v2 }
  0x16   :  { %783 = vmatpush3.msk.msra.mxu1 %vm410_vm13, %v818_v14  ;;  %746 = vmatprep.subr.msk.mxu0 %vm99_vm0, %v818_v14  ;;  %vm409_vm3 = vmor %vm373_vm11, %vm393_vm12  ;;  %vm80_vm11 = vcmp.eq.s32.totalorder %v40_v21, %v857_v3  ;;  %vm370_vm13 = vcmp.eq.s32.totalorder %v40_v21, %v867_v6 }
  0x17   :  { %784 = vmatprep.subr.msk.mxu1 %vm409_vm3, %v818_v14  ;;  %747 = vmatpush3.msk.msra.mxu0 %vm99_vm0, %v818_v14  ;;  %vm98_vm6 = vmor %vm62_vm14, %vm82_vm15  ;;  %vm390_vm14 = vcmp.eq.s32.totalorder %v40_v21, %v872_v7  ;;  %vm59_vm0 = vcmp.eq.s32.totalorder %v39_v22, %v852_v2 }
  0x18   :  { %785 = vmatpush3.msk.msra.mxu1 %vm409_vm3, %v818_v14  ;;  %748 = vmatprep.subr.msk.mxu0 %vm98_vm6, %v818_v14  ;;  %vm408_vm9 = vmor %vm372_vm1, %vm392_vm2  ;;  %vm79_vm1 = vcmp.eq.s32.totalorder %v39_v22, %v857_v3  ;;  %vm369_vm3 = vcmp.eq.s32.totalorder %v39_v22, %v867_v6 }
  0x19   :  { %786 = vmatprep.subr.msk.mxu1 %vm408_vm9, %v818_v14  ;;  %749 = vmatpush3.msk.msra.mxu0 %vm98_vm6, %v818_v14  ;;  %vm97_vm12 = vmor %vm61_vm4, %vm81_vm5  ;;  %vm389_vm4 = vcmp.eq.s32.totalorder %v39_v22, %v872_v7  ;;  %vm58_vm6 = vcmp.eq.s32.totalorder %v38_v23, %v852_v2 }
  0x1a   :  { %787 = vmatpush3.msk.msra.mxu1 %vm408_vm9, %v818_v14  ;;  %750 = vmatprep.subr.msk.mxu0 %vm97_vm12, %v818_v14  ;;  %vm407_vm15 = vmor %vm371_vm7, %vm391_vm8  ;;  %vm78_vm7 = vcmp.eq.s32.totalorder %v38_v23, %v857_v3  ;;  %vm368_vm9 = vcmp.eq.s32.totalorder %v38_v23, %v867_v6 }
  0x1b   :  { %788 = vmatprep.subr.msk.mxu1 %vm407_vm15, %v818_v14  ;;  %751 = vmatpush3.msk.msra.mxu0 %vm97_vm12, %v818_v14  ;;  %vm96_vm2 = vmor %vm60_vm10, %vm80_vm11  ;;  %vm388_vm10 = vcmp.eq.s32.totalorder %v38_v23, %v872_v7  ;;  %vm57_vm12 = vcmp.eq.s32.totalorder %v37_v24, %v852_v2 }
  0x1c   :  { %789 = vmatpush3.msk.msra.mxu1 %vm407_vm15, %v818_v14  ;;  %752 = vmatprep.subr.msk.mxu0 %vm96_vm2, %v818_v14  ;;  %vm406_vm5 = vmor %vm370_vm13, %vm390_vm14  ;;  %vm77_vm13 = vcmp.eq.s32.totalorder %v37_v24, %v857_v3  ;;  %vm367_vm15 = vcmp.eq.s32.totalorder %v37_v24, %v867_v6 }
  0x1d   :  { %790 = vmatprep.subr.msk.mxu1 %vm406_vm5, %v818_v14  ;;  %753 = vmatpush3.msk.msra.mxu0 %vm96_vm2, %v818_v14  ;;  %vm95_vm8 = vmor %vm59_vm0, %vm79_vm1  ;;  %vm387_vm0 = vcmp.eq.s32.totalorder %v37_v24, %v872_v7  ;;  %vm56_vm2 = vcmp.eq.s32.totalorder %v36_v25, %v852_v2 }
  0x1e   :  { %791 = vmatpush3.msk.msra.mxu1 %vm406_vm5, %v818_v14  ;;  %754 = vmatprep.subr.msk.mxu0 %vm95_vm8, %v818_v14  ;;  %vm405_vm11 = vmor %vm369_vm3, %vm389_vm4  ;;  %vm76_vm3 = vcmp.eq.s32.totalorder %v36_v25, %v857_v3  ;;  %vm366_vm5 = vcmp.eq.s32.totalorder %v36_v25, %v867_v6 }
  0x1f   :  { %792 = vmatprep.subr.msk.mxu1 %vm405_vm11, %v818_v14  ;;  %755 = vmatpush3.msk.msra.mxu0 %vm95_vm8, %v818_v14  ;;  %vm94_vm14 = vmor %vm58_vm6, %vm78_vm7  ;;  %vm386_vm6 = vcmp.eq.s32.totalorder %v36_v25, %v872_v7  ;;  %vm55_vm8 = vcmp.eq.s32.totalorder %v859_v4, %v852_v2 }
  0x20   :  { %793 = vmatpush3.msk.msra.mxu1 %vm405_vm11, %v818_v14  ;;  %756 = vmatprep.subr.msk.mxu0 %vm94_vm14, %v818_v14  ;;  %vm404_vm1 = vmor %vm368_vm9, %vm388_vm10  ;;  %vm75_vm9 = vcmp.eq.s32.totalorder %v859_v4, %v857_v3  ;;  %vm365_vm11 = vcmp.eq.s32.totalorder %v859_v4, %v867_v6 }
  0x21   :  { %794 = vmatprep.subr.msk.mxu1 %vm404_vm1, %v818_v14  ;;  %757 = vmatpush3.msk.msra.mxu0 %vm94_vm14, %v818_v14  ;;  %vm93_vm4 = vmor %vm57_vm12, %vm77_vm13  ;;  %vm385_vm12 = vcmp.eq.s32.totalorder %v859_v4, %v872_v7 }
  0x22   :  { %795 = vmatpush3.msk.msra.mxu1 %vm404_vm1, %v818_v14  ;;  %758 = vmatprep.subr.msk.mxu0 %vm93_vm4, %v818_v14  ;;  %vm403_vm7 = vmor %vm367_vm15, %vm387_vm0  ;;  %vm342_vm0 = vcmask 261120   ;;  %vm618_vm1 = vcmask 257024  }
  0x23   :  { %796 = vmatprep.subr.msk.mxu1 %vm403_vm7, %v818_v14  ;;  %759 = vmatpush3.msk.msra.mxu0 %vm93_vm4, %v818_v14  ;;  %vm92_vm10 = vmor %vm56_vm2, %vm76_vm3 }
  0x24   :  { %797 = vmatpush3.msk.msra.mxu1 %vm403_vm7, %v818_v14  ;;  %760 = vmatprep.subr.msk.mxu0 %vm92_vm10, %v818_v14  ;;  %vm402_vm13 = vmor %vm366_vm5, %vm386_vm6 }
  0x25   :  { %798 = vmatprep.subr.msk.mxu1 %vm402_vm13, %v818_v14  ;;  %761 = vmatpush3.msk.msra.mxu0 %vm92_vm10, %v818_v14  ;;  %vm91_vm14 = vmor %vm55_vm8, %vm75_vm9 }
  0x26   :  { %799 = vmatpush3.msk.msra.mxu1 %vm402_vm13, %v818_v14  ;;  %762 = vmatprep.subr.msk.mxu0 %vm91_vm14, %v818_v14  ;;  %vm401_vm15 = vmor %vm365_vm11, %vm385_vm12 }
  0x27   :  { %800 = vmatprep.subr.msk.mxu1 %vm401_vm15, %v818_v14  ;;  %763 = vmatpush3.msk.msra.mxu0 %vm91_vm14, %v818_v14 }
  0x28   :  { %801 = vmatpush3.msk.msra.mxu1 %vm401_vm15, %v818_v14  ;;  %765 = vmatmul.mubr.f32.vlgmr.msra.gmra.mxu0 %v21_v26 }
  0x29   :  { %803 = vmatmul.mubr.f32.vlgmr.msra.gmra.mxu1 %v21_v26  ;;  %767 = vmatprep.mubr.f32.mxu0 %v22_v27 }
  0x2a   :  { %805 = vmatprep.mubr.f32.mxu1 %v22_v27  ;;  %269 = vperm.xlu0 %811, %v25_v28  }
  0x2b   :  { %274 = vperm.xlu1 %812, %v26_v29  }
  0x2c   :  { %768 = vmatmul.mubr.f32.gmra.mxu0 %v23_v30 }
  0x2d   :  { %806 = vmatmul.mubr.f32.gmra.mxu1 %v23_v30 }
  0x2e   :  { %293 = vperm.xlu0 %811, %v29_v31  }
  0x2f   :  { %279 = vperm.xlu1 %812, %v27_v32  }
  0x32   :  { %298 = vperm.xlu0 %811, %v30_v33  }
  0x33   :  { %303 = vperm.xlu1 %812, %v31_v34  }
  0xe8   :  { %v766_v36 = vpop.f32.mrf.mxu0 }
  0xe9   :  { %v804_v38 = vpop.f32.mrf.mxu1  ;;  %v215_v48 = vadd.f32 %v766_v36, %v140_v40 }
  0xea   :  { %v525_v41 = vadd.f32 %v804_v38, %v450_v35  ;;  %v209_v42 = vpop.f32.mrf.mxu0 }
  0xeb   :  { %v210_v43 = vadd.f32 %v209_v42, %v139_v37  ;;  %v519_v44 = vpop.f32.mrf.mxu1 }
  0xec   :  { %v520_v45 = vadd.f32 %v519_v44, %v449_v39  ;;  %v769_v46 = vpop.f32.mrf.mxu0 }
  0xed   :  { %v807_v50 = vpop.f32.mrf.mxu1  ;;  %v228_v55 = vadd.f32 %v215_v48, %v210_v43  ;;  %v225_v60 = vadd.f32 %v769_v46, %v142_v53  ;;  %v265_v53 = vpop.permute.xlu0 %264 }
  0xee   :  { %v538_v52 = vadd.f32 %v525_v41, %v520_v45  ;;  %v219_v54 = vpop.f32.mrf.mxu0  ;;  %v535_v58 = vadd.f32 %v807_v50, %v452_v49 }
  0xef   :  { %v220_v56 = vadd.f32 %v219_v54, %v141_v47  ;;  %v529_v57 = vpop.f32.mrf.mxu1  ;;  %v289_v54 = vpop.permute.xlu1 %288 }
  0xf0   :  { %v530_v59 = vadd.f32 %v529_v57, %v451_v51 }
  0xf1   :  { %v229_v61 = vadd.f32 %v228_v55, %v220_v56 }
  0xf2   :  { %v539_v62 = vadd.f32 %v538_v52, %v530_v59 }
  0xf3   :  { %v230_v63 = vadd.f32 %v229_v61, %v225_v60 }
  0xf4   :  { %v540_v0 = vadd.f32 %v539_v62, %v535_v58  ;;  %v275_v62 = vpop.permute.xlu1 %274 }
  0xf5   :  { %v231_v1 = vrot.slane %v230_v63, 4 }
  0xf6   :  { %v541_v2 = vrot.slane %v540_v0, 4 }
  0xf7   :  { %v232_v3 = vadd.f32 %v231_v1, %v230_v63 }
  0xf8   :  { %v542_v4 = vadd.f32 %v541_v2, %v540_v0 }
  0xf9   :  { %v233_v5 = vrot.slane %v232_v3, 2 }
  0xfa   :  { %v543_v6 = vrot.slane %v542_v4, 2 }
  0xfb   :  { %v234_v7 = vadd.f32 %v233_v5, %v232_v3 }
  0xfc   :  { %v544_v8 = vadd.f32 %v543_v6, %v542_v4 }
  0xfd   :  { %v235_v9 = vrot.slane %v234_v7, 1 }
  0xfe   :  { %v545_v10 = vrot.slane %v544_v8, 1 }
  0xff   :  { %v236_v11 = vadd.f32 %v235_v9, %v234_v7 }
 0x100   :  { %v546_v12 = vadd.f32 %v545_v10, %v544_v8  ;;  %v280_v8 = vpop.permute.xlu1 %279 }
 0x101   :  { %v237_v13 = vmul.f32 0.03125, %v236_v11 }
 0x102   :  { %v547_v14 = vmul.f32 0.03125, %v546_v12 }
 0x103   :  { %v240_v15 = vsub.f32 %v220_v56, %v237_v13  ;;  %v238_v16 = vsub.f32 %v210_v43, %v237_v13  ;;  %v239_v17 = vsub.f32 %v215_v48, %v237_v13  ;;  %v241_v22 = vsub.f32 %v225_v60, %v237_v13  ;;  %v270_v56 = vpop.permute.xlu0 %269 }
 0x104   :  { %v550_v18 = vsub.f32 %v530_v59, %v547_v14  ;;  %v1142_v19 = vsub.f32 %v535_v58, %v547_v14  ;;  %v548_v20 = vsub.f32 %v520_v45, %v547_v14  ;;  %v549_v21 = vsub.f32 %v525_v41, %v547_v14 }
 0x105   :  { %v242_v23 = vmul.f32 %v238_v16, %v238_v16  ;;  %v243_v24 = vmul.f32 %v239_v17, %v239_v17  ;;  %v244_v28 = vmul.f32 %v240_v15, %v240_v15  ;;  %v245_v32 = vmul.f32 %v241_v22, %v241_v22 }
 0x106   :  { %v554_v25 = vmul.f32 %v550_v18, %v550_v18  ;;  %v552_v26 = vmul.f32 %v548_v20, %v548_v20  ;;  %v553_v27 = vmul.f32 %v549_v21, %v549_v21  ;;  %v555_v30 = vmul.f32 %v1142_v19, %v1142_v19 }
 0x107   :  { %v246_v29 = vadd.f32 %v243_v24, %v242_v23  ;;  %v294_v7 = vpop.permute.xlu0 %293  ;;  %v304_v23 = vpop.permute.xlu1 %303 }
 0x108   :  { %v556_v31 = vadd.f32 %v553_v27, %v552_v26 }
 0x109   :  { %v247_v33 = vadd.f32 %v246_v29, %v244_v28 }
 0x10a   :  { %v557_v34 = vadd.f32 %v556_v31, %v554_v25 }
 0x10b   :  { %v248_v35 = vadd.f32 %v247_v33, %v245_v32 }
 0x10c   :  { %v558_v36 = vadd.f32 %v557_v34, %v555_v30 }
 0x10d   :  { %v249_v37 = vrot.slane %v248_v35, 4 }
 0x10e   :  { %v559_v38 = vrot.slane %v558_v36, 4 }
 0x10f   :  { %v250_v39 = vadd.f32 %v249_v37, %v248_v35 }
 0x110   :  { %v560_v40 = vadd.f32 %v559_v38, %v558_v36 }
 0x111   :  { %v251_v41 = vrot.slane %v250_v39, 2 }
 0x112   :  { %v561_v42 = vrot.slane %v560_v40, 2 }
 0x113   :  { %v252_v43 = vadd.f32 %v251_v41, %v250_v39 }
 0x114   :  { %v562_v44 = vadd.f32 %v561_v42, %v560_v40 }
 0x115   :  { %v253_v45 = vrot.slane %v252_v43, 1 }
 0x116   :  { %v563_v46 = vrot.slane %v562_v44, 1 }
 0x117   :  { %v254_v47 = vadd.f32 %v253_v45, %v252_v43 }
 0x118   :  { %v564_v48 = vadd.f32 %v563_v46, %v562_v44 }
 0x119   :  { %v255_v49 = vmul.f32 0.03125, %v254_v47 }
 0x11a   :  { %v565_v50 = vmul.f32 0.03125, %v564_v48 }
 0x11b   :  { %v256_v51 = vadd.f32 1e-05, %v255_v49 }
 0x11c   :  { %v566_v52 = vadd.f32 1e-05, %v565_v50 }
 0x11d   :  { %813 = vrsqrt.f32 %v256_v51 }
 0x11e   :  { %815 = vrsqrt.f32 %v566_v52 }
 0x12a   :  { %v814_v55 = vpop.eup %813 }
 0x12b   :  { %v816_v57 = vpop.eup %815  ;;  %v258_v58 = vmul.f32 %v814_v55, %v238_v16  ;;  %v259_v59 = vmul.f32 %v814_v55, %v239_v17  ;;  %v260_v3 = vmul.f32 %v814_v55, %v240_v15  ;;  %v261_v11 = vmul.f32 %v814_v55, %v241_v22  ;;  %v299_v16 = vpop.permute.xlu0 %298 }
 0x12c   :  { %v568_v60 = vmul.f32 %v816_v57, %v548_v20  ;;  %v569_v61 = vmul.f32 %v816_v57, %v549_v21  ;;  %v570_v6 = vmul.f32 %v816_v57, %v550_v18  ;;  %v571_v14 = vmul.f32 %v816_v57, %v1142_v19 }
 0x12d   :  { %v282_v63 = vmul.f32 %v265_v53, %v258_v58  ;;  %v283_v2 = vmul.f32 %v270_v56, %v259_v59  ;;  %v284_v9 = vmul.f32 %v275_v62, %v260_v3  ;;  %v285_v17 = vmul.f32 %v280_v8, %v261_v11 }
 0x12e   :  { %v572_v0 = vmul.f32 %v568_v60, %v265_v53  ;;  %v573_v5 = vmul.f32 %v569_v61, %v270_v56  ;;  %v574_v12 = vmul.f32 %v570_v6, %v275_v62  ;;  %v575_v15 = vmul.f32 %v571_v14, %v280_v8 }
 0x12f   :  { %v306_v1 = vadd.f32 %v289_v54, %v282_v63  ;;  %v307_v10 = vadd.f32 %v294_v7, %v283_v2  ;;  %v308_v20 = vadd.f32 %v299_v16, %v284_v9  ;;  %v309_v18 = vadd.f32 %v304_v23, %v285_v17 }
 0x130   :  { %v576_v4 = vadd.f32 %v572_v0, %v289_v54  ;;  %v577_v13 = vadd.f32 %v573_v5, %v294_v7  ;;  %v578_v21 = vadd.f32 %v574_v12, %v299_v16  ;;  %v579_v24 = vadd.f32 %v575_v15, %v304_v23 }
 0x131   :  { %310 = vxpose.xlu0.b32.start [1/4] (short) %v306_v1, 128 }
 0x132   :  { %580 = vxpose.xlu1.b32.start [1/4] (short) (narrow) %v576_v4, 56 }
 0x135   :  { %311 = vxpose.xlu0.b32.cont [2/4] (short) %v307_v10, 128 }
 0x136   :  { %581 = vxpose.xlu1.b32.cont [2/4] (short) (narrow) %v577_v13, 56 }
 0x139   :  { %312 = vxpose.xlu0.b32.cont [3/4] (short) %v308_v20, 128 }
 0x13a   :  { %582 = vxpose.xlu1.b32.cont [3/4] (short) (narrow) %v578_v21, 56 }
 0x13d   :  { %313 = vxpose.xlu0.b32.end [4/4] (short) %v309_v18, 128 }
 0x13e   :  { %583 = vxpose.xlu1.b32.end [4/4] (short) (narrow) %v579_v24, 56 }
 0x1ad   :  { %v326_v22 = vpop.trf.xlu0 }
 0x1ae   :  { %343 = vst.msk [vmem:[%s1243_s5] sm:$0xff] %vm342_vm0, %v326_v22  ;;  %v596_v19 = vpop.trf.xlu1 }
 0x1af   :  { %612 = vst.msk [vmem:[%s1243_s5 + $0x80] sm:$0xff] %vm342_vm0, %v596_v19 }
 0x1b1   :  { %v327_v25 = vpop.trf.xlu0 }
 0x1b2   :  { %344 = vst.msk [vmem:[%s1243_s5 + $0x8] sm:$0xff] %vm342_vm0, %v327_v25  ;;  %v597_v26 = vpop.trf.xlu1 }
 0x1b3   :  { %613 = vst.msk [vmem:[%s1243_s5 + $0x88] sm:$0xff] %vm342_vm0, %v597_v26 }
 0x1b5   :  { %v328_v27 = vpop.trf.xlu0 }
 0x1b6   :  { %345 = vst.msk [vmem:[%s1243_s5 + $0x10] sm:$0xff] %vm342_vm0, %v328_v27  ;;  %v598_v28 = vpop.trf.xlu1 }
 0x1b7   :  { %614 = vst.msk [vmem:[%s1243_s5 + $0x90] sm:$0xff] %vm342_vm0, %v598_v28 }
 0x1b9   :  { %v329_v29 = vpop.trf.xlu0 }
 0x1ba   :  { %346 = vst.msk [vmem:[%s1243_s5 + $0x18] sm:$0xff] %vm342_vm0, %v329_v29  ;;  %v599_v30 = vpop.trf.xlu1 }
 0x1bb   :  { %615 = vst.msk [vmem:[%s1243_s5 + $0x98] sm:$0xff] %vm342_vm0, %v599_v30 }
 0x1bd   :  { %v330_v31 = vpop.trf.xlu0 }
 0x1be   :  { %347 = vst.msk [vmem:[%s1243_s5 + $0x20] sm:$0xff] %vm342_vm0, %v330_v31  ;;  %v600_v32 = vpop.trf.xlu1 }
 0x1bf   :  { %616 = vst.msk [vmem:[%s1243_s5 + $0xa0] sm:$0xff] %vm342_vm0, %v600_v32 }
 0x1c1   :  { %v331_v33 = vpop.trf.xlu0 }
 0x1c2   :  { %348 = vst.msk [vmem:[%s1243_s5 + $0x28] sm:$0xff] %vm342_vm0, %v331_v33  ;;  %v601_v34 = vpop.trf.xlu1 }
 0x1c3   :  { %617 = vst.msk [vmem:[%s1243_s5 + $0xa8] sm:$0xff] %vm342_vm0, %v601_v34 }
 0x1c5   :  { %v332_v35 = vpop.trf.xlu0 }
 0x1c6   :  { %349 = vst.msk [vmem:[%s1243_s5 + $0x30] sm:$0xff] %vm342_vm0, %v332_v35  ;;  %v602_v36 = vpop.trf.xlu1 }
 0x1c7   :  { %619 = vst.msk [vmem:[%s1243_s5 + $0xb0] sm:$0xf] %vm618_vm1, %v602_v36 }
 0x1c9   :  { %v333_v37 = vpop.trf.xlu0 }
 0x1ca   :  { %350 = vst.msk [vmem:[%s1243_s5 + $0x38] sm:$0xff] %vm342_vm0, %v333_v37 }
 0x1cd   :  { %v334_v38 = vpop.trf.xlu0 }
 0x1ce   :  { %351 = vst.msk [vmem:[%s1243_s5 + $0x40] sm:$0xff] %vm342_vm0, %v334_v38 }
 0x1d1   :  { %v335_v39 = vpop.trf.xlu0 }
 0x1d2   :  { %352 = vst.msk [vmem:[%s1243_s5 + $0x48] sm:$0xff] %vm342_vm0, %v335_v39 }
 0x1d5   :  { %v336_v40 = vpop.trf.xlu0 }
 0x1d6   :  { %353 = vst.msk [vmem:[%s1243_s5 + $0x50] sm:$0xff] %vm342_vm0, %v336_v40 }
 0x1d9   :  { %v337_v41 = vpop.trf.xlu0 }
 0x1da   :  { %354 = vst.msk [vmem:[%s1243_s5 + $0x58] sm:$0xff] %vm342_vm0, %v337_v41 }
 0x1dd   :  { %v338_v42 = vpop.trf.xlu0 }
 0x1de   :  { %355 = vst.msk [vmem:[%s1243_s5 + $0x60] sm:$0xff] %vm342_vm0, %v338_v42 }
 0x1e1   :  { %v339_v43 = vpop.trf.xlu0 }
 0x1e2   :  { %356 = vst.msk [vmem:[%s1243_s5 + $0x68] sm:$0xff] %vm342_vm0, %v339_v43 }
 0x1e5   :  { %v340_v44 = vpop.trf.xlu0 }
 0x1e6   :  { %357 = vst.msk [vmem:[%s1243_s5 + $0x70] sm:$0xff] %vm342_vm0, %v340_v44 }
 0x1e9   :  { %v341_v45 = vpop.trf.xlu0 }
 0x1ea   :  { %358 = vst.msk [vmem:[%s1243_s5 + $0x78] sm:$0xff] %vm342_vm0, %v341_v45 }

</bundles_post_ra>
